<compile_context>
chip_gen: v5e
topology: v5e:2x2
jax: 0.10.0
libtpu: 0.0.40
codegen_flags: <defaults>
</compile_context>

<pallas_src>
import functools

import jax
import jax.numpy as jnp
from jax import lax
from jax.experimental import pallas as pl
from jax.experimental.pallas import tpu as pltpu

_LANE = 128        # TPU lane width
_TILE_B = 2048     # batch-tile (lane) width for the gridded path

# Packed parameter layout (single f32[48, 16] array, one DMA, VMEM resident):
#   P[ 0:16, 0: 4] = W12^T  where W12 = W1 @ W2  (folded Linear(4->16) o Linear(16->16))
#   P[16:32, 0: 1] = b12    where b12 = b1 @ W2 + b2
#   P[32:36, 0:16] = W3^T
#   P[40:44, 0: 1] = b3
_P_SHAPE = (48, 16)


def _round_up(n, m):
    return ((n + m - 1) // m) * m


def _mlp_feature_major(p_ref, x):
    """Feature-major MLP: x [4, TB] -> logits [4, TB]. Batch maps to lanes."""
    w12t = p_ref[0:16, 0:4]     # [16, 4]
    b12 = p_ref[16:32, 0:1]     # [16, 1]
    w3t = p_ref[32:36, 0:16]    # [4, 16]
    b3 = p_ref[40:44, 0:1]      # [4, 1]
    h = jnp.dot(w12t, x, preferred_element_type=jnp.float32) + b12      # [16, TB]
    h = 0.5 * (jnp.tanh(0.5 * h) + 1.0)   # sigmoid via EUP tanh (keeps VALU slots free)
    return jnp.dot(w3t, h, preferred_element_type=jnp.float32) + b3     # [4, TB]


def _fused_kernel(p_ref, x_ref, o_ref, *, n_valid):
    """Small batch: whole padded batch in one tile; softmax(dim=0) == lane softmax."""
    y = _mlp_feature_major(p_ref, x_ref[...])                    # [4, B_pad]
    col = lax.broadcasted_iota(jnp.int32, y.shape, 1)
    y = jnp.where(col < n_valid, y, -jnp.inf)                    # padded lanes don't count
    m = jnp.max(y, axis=-1, keepdims=True)
    e = jnp.exp(y - m)
    l = jnp.sum(e, axis=-1, keepdims=True)
    o_ref[...] = e * pl.reciprocal(l, approx=True)               # EUP reciprocal


def _stats_kernel(p_ref, x_ref, m_ref, l_ref, *, n_valid, tile_b):
    """Pass 1 (large batch): online max / exp-sum over the batch (lane) axis.

    Only the tiny (4,1) accumulators are written out; the logits are recomputed in
    pass 2 instead of being stored to / reloaded from HBM.
    """
    i = pl.program_id(0)

    @pl.when(i == 0)
    def _():
        m_ref[...] = jnp.full((4, 1), -jnp.inf, jnp.float32)
        l_ref[...] = jnp.zeros((4, 1), jnp.float32)

    y = _mlp_feature_major(p_ref, x_ref[...])                    # [4, TB]
    col = i * tile_b + lax.broadcasted_iota(jnp.int32, y.shape, 1)
    y = jnp.where(col < n_valid, y, -jnp.inf)                    # mask ragged last tile

    m_old = m_ref[...]
    l_old = l_ref[...]
    m_new = jnp.maximum(m_old, jnp.max(y, axis=-1, keepdims=True))
    l_ref[...] = l_old * jnp.exp(m_old - m_new) + jnp.sum(
        jnp.exp(y - m_new), axis=-1, keepdims=True)
    m_ref[...] = m_new


def _normalize_kernel(p_ref, m_ref, l_ref, x_ref, o_ref):
    """Pass 2 (large batch): recompute the (tiny) MLP and normalize with global stats."""
    y = _mlp_feature_major(p_ref, x_ref[...])                    # [4, TB]
    inv_l = pl.reciprocal(l_ref[...], approx=True)               # EUP reciprocal
    o_ref[...] = jnp.exp(y - m_ref[...]) * inv_l                 # lane-dense store


def _pack_params(w1, b1, w2, b2, w3, b3):
    """Fold the two back-to-back Linears and pack everything into one f32[48,16] array."""
    w12 = w1 @ w2                                       # [4, 16]
    b12 = b1.reshape(1, -1) @ w2 + b2.reshape(1, -1)    # [1, 16]
    p = jnp.zeros(_P_SHAPE, jnp.float32)
    p = p.at[0:16, 0:4].set(w12.T)
    p = p.at[16:32, 0:1].set(b12.reshape(16, 1))
    p = p.at[32:36, 0:16].set(w3.T)
    p = p.at[40:44, 0:1].set(b3.reshape(4, 1))
    return p


@jax.jit
def nightwing_forward(x, w1, b1, w2, b2, w3, b3):
    """x: [B, 4] f32; weights stored [in, out]; biases [1, out]. Returns softmax(dim=0) probs, [B, 4]."""
    B = x.shape[0]
    p = _pack_params(w1, b1, w2, b2, w3, b3)

    b_lane = _round_up(B, _LANE)
    tb = min(_TILE_B, b_lane)
    b_pad = _round_up(B, tb)
    n_tiles = b_pad // tb

    # Feature-major, lane-padded input: [4, B_pad]
    xt = jnp.pad(x.T.astype(jnp.float32), ((0, 0), (0, b_pad - B)))

    if n_tiles == 1:
        # Tiny/medium batch (B <= 2048): one fused call — everything is fixed overhead.
        vmem = pl.BlockSpec(memory_space=pltpu.MemorySpace.VMEM)
        out_pad = pl.pallas_call(
            functools.partial(_fused_kernel, n_valid=B),
            out_shape=jax.ShapeDtypeStruct((4, b_pad), jnp.float32),
            in_specs=[vmem, vmem],
            out_specs=vmem,
        )(p, xt)
    else:
        # Pass 1: online softmax stats only. The batch axis is "arbitrary" because
        # softmax(dim=0) is a cross-tile reduction into resident (4,1) accumulators.
        m, l = pl.pallas_call(
            functools.partial(_stats_kernel, n_valid=B, tile_b=tb),
            out_shape=(jax.ShapeDtypeStruct((4, 1), jnp.float32),
                       jax.ShapeDtypeStruct((4, 1), jnp.float32)),
            grid_spec=pltpu.PrefetchScalarGridSpec(
                num_scalar_prefetch=0,
                grid=(n_tiles,),
                in_specs=[pl.BlockSpec(_P_SHAPE, lambda i: (0, 0)),   # weights stay resident
                          pl.BlockSpec((4, tb), lambda i: (0, i))],
                out_specs=[pl.BlockSpec((4, 1), lambda i: (0, 0)),    # resident accumulators
                           pl.BlockSpec((4, 1), lambda i: (0, 0))],
            ),
            compiler_params=pltpu.CompilerParams(
                dimension_semantics=("arbitrary",)),
        )(p, xt)

        # Pass 2: recompute logits (cheap) + normalize. Tiles are independent ->
        # "parallel" (megacore sharding on v7x). No (4,B) intermediate ever hits HBM.
        out_pad = pl.pallas_call(
            _normalize_kernel,
            out_shape=jax.ShapeDtypeStruct((4, b_pad), jnp.float32),
            grid_spec=pltpu.PrefetchScalarGridSpec(
                num_scalar_prefetch=0,
                grid=(n_tiles,),
                in_specs=[pl.BlockSpec(_P_SHAPE, lambda i: (0, 0)),
                          pl.BlockSpec((4, 1), lambda i: (0, 0)),
                          pl.BlockSpec((4, 1), lambda i: (0, 0)),
                          pl.BlockSpec((4, tb), lambda i: (0, i))],
                out_specs=pl.BlockSpec((4, tb), lambda i: (0, i)),
            ),
            compiler_params=pltpu.CompilerParams(
                dimension_semantics=("parallel",)),
        )(p, m, l, xt)

    return out_pad[:, :B].T


def init_params(key):
    """PyTorch nn.Linear default init U(-1/sqrt(fan_in), +1/sqrt(fan_in)); weights stored [in, out]."""
    ks = jax.random.split(key, 6)

    def lin(kw, kb, fan_in, fan_out):
        bound = 1.0 / (fan_in ** 0.5)
        w = jax.random.uniform(kw, (fan_in, fan_out), jnp.float32, -bound, bound)
        b = jax.random.uniform(kb, (1, fan_out), jnp.float32, -bound, bound)
        return w, b

    w1, b1 = lin(ks[0], ks[1], 4, 16)   # inputl
    w2, b2 = lin(ks[2], ks[3], 16, 16)  # hidden
    w3, b3 = lin(ks[4], ks[5], 16, 4)   # output
    return w1, b1, w2, b2, w3, b3


def reference_forward(x, w1, b1, w2, b2, w3, b3):
    """Unfused pure-JAX reference matching the PyTorch forward exactly."""
    h = x @ w1 + b1
    h = h @ w2 + b2
    h = jax.nn.sigmoid(h)
    y = h @ w3 + b3
    return jax.nn.softmax(y, axis=0)


if __name__ == "__main__":
    key = jax.random.PRNGKey(0)
    k_x, k_p = jax.random.split(key)
    params = init_params(k_p)

    # Small batch of "bars" (B=8, 4 features each): exercises the single fused kernel.
    B = 8
    x = jax.random.normal(k_x, (B, 4), jnp.float32)
    out = jax.block_until_ready(nightwing_forward(x, *params))
    ref = reference_forward(x, *params)
    assert out.shape == (B, 4)
    # Tolerance covers the f32 rounding of the W1@W2 fold and the EUP approximate
    # reciprocal in the softmax denominator; genuine layout/indexing bugs would be O(1).
    assert jnp.allclose(out, ref, atol=1e-4, rtol=1e-2), "mismatch vs reference (fused path)"

    # Also validate the tiled two-pass-softmax path (2 batch tiles, ragged last tile).
    B2 = 2600
    x2 = jax.random.normal(k_x, (B2, 4), jnp.float32)
    out2 = jax.block_until_ready(nightwing_forward(x2, *params))
    ref2 = reference_forward(x2, *params)
    assert jnp.allclose(out2, ref2, atol=1e-5, rtol=1e-2), "mismatch vs reference (tiled path)"

    print("KERNEL_OK")
</pallas_src>

<mosaic_0001>
module attributes {stable_mosaic.version = 11 : i64} {
  func.func @_fused_kernel(%arg0: memref<48x16xf32, #tpu.memory_space<vmem>>, %arg1: memref<4x128xf32, #tpu.memory_space<vmem>>, %arg2: memref<4x128xf32, #tpu.memory_space<vmem>>) attributes {dimension_semantics = [], scalar_prefetch = 0 : i64, scratch_operands = 0 : i64, tpu.core_type = #tpu.core_type<tc>} {
    %c0 = arith.constant 0 : index
    %c0_0 = arith.constant 0 : index
    %0 = vector.load %arg1[%c0, %c0_0] : memref<4x128xf32, #tpu.memory_space<vmem>>, vector<4x128xf32>
    %c0_1 = arith.constant 0 : index
    %c0_2 = arith.constant 0 : index
    %1 = vector.load %arg0[%c0_1, %c0_2] : memref<48x16xf32, #tpu.memory_space<vmem>>, vector<16x4xf32>
    %c16 = arith.constant 16 : index
    %c0_3 = arith.constant 0 : index
    %2 = vector.load %arg0[%c16, %c0_3] : memref<48x16xf32, #tpu.memory_space<vmem>>, vector<16x1xf32>
    %c32 = arith.constant 32 : index
    %c0_4 = arith.constant 0 : index
    %3 = vector.load %arg0[%c32, %c0_4] : memref<48x16xf32, #tpu.memory_space<vmem>>, vector<4x16xf32>
    %c40 = arith.constant 40 : index
    %c0_5 = arith.constant 0 : index
    %4 = vector.load %arg0[%c40, %c0_5] : memref<48x16xf32, #tpu.memory_space<vmem>>, vector<4x1xf32>
    %cst = arith.constant dense<0.000000e+00> : vector<16x128xf32>
    %5 = tpu.matmul %1, %0, %cst {dimension_numbers = #tpu.dot_dimension_numbers<[1], [0], [0], [1], [0, 0, 1, 1], [], []>} : vector<16x4xf32>, vector<4x128xf32>, vector<16x128xf32> -> vector<16x128xf32>
    %6 = vector.broadcast %2 : vector<16x1xf32> to vector<16x128xf32>
    %7 = arith.addf %5, %6 : vector<16x128xf32>
    %cst_6 = arith.constant 5.000000e-01 : f32
    %8 = vector.broadcast %cst_6 : f32 to vector<16x128xf32>
    %9 = arith.mulf %8, %7 : vector<16x128xf32>
    %10 = math.tanh %9 : vector<16x128xf32>
    %cst_7 = arith.constant 1.000000e+00 : f32
    %11 = vector.broadcast %cst_7 : f32 to vector<16x128xf32>
    %12 = arith.addf %10, %11 : vector<16x128xf32>
    %cst_8 = arith.constant 5.000000e-01 : f32
    %13 = vector.broadcast %cst_8 : f32 to vector<16x128xf32>
    %14 = arith.mulf %13, %12 : vector<16x128xf32>
    %cst_9 = arith.constant dense<0.000000e+00> : vector<4x128xf32>
    %15 = tpu.matmul %3, %14, %cst_9 {dimension_numbers = #tpu.dot_dimension_numbers<[1], [0], [0], [1], [0, 0, 1, 1], [], []>} : vector<4x16xf32>, vector<16x128xf32>, vector<4x128xf32> -> vector<4x128xf32>
    %16 = vector.broadcast %4 : vector<4x1xf32> to vector<4x128xf32>
    %17 = arith.addf %15, %16 : vector<4x128xf32>
    %18 = tpu.iota {dimensions = array<i32: 1>} : vector<4x128xi32>
    %c8_i32 = arith.constant 8 : i32
    %19 = vector.broadcast %c8_i32 : i32 to vector<4x128xi32>
    %20 = arith.cmpi slt, %18, %19 : vector<4x128xi32>
    %cst_10 = arith.constant 0xFF800000 : f32
    %21 = vector.broadcast %cst_10 : f32 to vector<4x128xf32>
    %22 = arith.select %20, %17, %21 : vector<4x128xi1>, vector<4x128xf32>
    %cst_11 = arith.constant dense<0xFF800000> : vector<4xf32>
    %23 = vector.multi_reduction <maximumf>, %22, %cst_11 [1] : vector<4x128xf32> to vector<4xf32>
    %24 = vector.shape_cast %23 : vector<4xf32> to vector<4x1xf32>
    %25 = vector.broadcast %24 : vector<4x1xf32> to vector<4x128xf32>
    %26 = arith.subf %22, %25 : vector<4x128xf32>
    %27 = math.exp %26 : vector<4x128xf32>
    %cst_12 = arith.constant dense<0.000000e+00> : vector<4xf32>
    %28 = vector.multi_reduction <add>, %27, %cst_12 [1] : vector<4x128xf32> to vector<4xf32>
    %29 = vector.shape_cast %28 : vector<4xf32> to vector<4x1xf32>
    %30 = tpu.reciprocal %29 {approx = true} : vector<4x1xf32> -> vector<4x1xf32>
    %31 = vector.broadcast %30 : vector<4x1xf32> to vector<4x128xf32>
    %32 = arith.mulf %27, %31 : vector<4x128xf32>
    %c0_13 = arith.constant 0 : index
    %c0_14 = arith.constant 0 : index
    %33 = vector.load %arg2[%c0_13, %c0_14] : memref<4x128xf32, #tpu.memory_space<vmem>>, vector<4x128xf32>
    tpu.vector_store %arg2[%c0_13, %c0_14], %32 {strides = array<i32>} : memref<4x128xf32, #tpu.memory_space<vmem>>, vector<4x128xf32>,
    return
  }
}

</mosaic_0001>

<bundles_post_ra>
// kernel: nightwing_forward.1
= control target key start
LH: loop header
LB: loop body
LE: loop exit
PB: predicated region body
PF: predicated region fallthrough
CT: control target
= control target key end

     0   :  { %vm35_vm0 = vcmask 1043456   ;;  %vm28_vm1 = vcmask 31744   ;;  %v135_v3 = vmov 0   ;;  %vm75_vm2 = vcmask 130048   ;;  %s179_s1 = inlined_call_operand.vmem [shape: f32[4,128], index: 1, kind: input, shape index: {}]   ;;  %s180_s0 = inlined_call_operand.vmem [shape: f32[48,16], index: 0, kind: input, shape index: {}]   ;;  %s181_s2 = inlined_call_operand.vmem [shape: f32[4,128], index: 2, kind: output, shape index: {}]  }
   0x1   :  { %v11_v0 = vld [vmem:[%s179_s1] sm:$0xf]  ;;  %v13_v2 = vld [vmem:[%s180_s0 + $0x8] sm:$0xff]  ;;  %125 = vset.pattern.permute.xlu0 %v135_v3  ;;  %126 = vset.pattern.permute.xlu1 %v135_v3  ;;  %v15_v4 = vld [vmem:[%s180_s0 + $0x18] sm:$0xff]  ;;  %v99_v22 = vlaneseq }
   0x2   :  { %v12_v1 = vld [vmem:[%s180_s0] sm:$0xff]  ;;  %119 = vmatpush.msk.msra.mxu0 %vm35_vm0, %v11_v0  ;;  %123 = vmatpush.msk.msra.mxu2 %vm35_vm0, %v11_v0  ;;  %v14_v5 = vld [vmem:[%s180_s0 + $0x10] sm:$0xff]  ;;  %v17_v7 = vld [vmem:[%s180_s0 + $0x28] sm:$0xf] }
   0x3   :  { %120 = vmatmul.msk.f32.vlgmr.msra.gmra.mxu0 %vm28_vm1, %v12_v1  ;;  %121 = vmatmul.msk.f32.vlgmr.msra.gmra.mxu2 %vm28_vm1, %v13_v2  ;;  %v16_v21 = vld [vmem:[%s180_s0 + $0x20] sm:$0xf]  ;;  %v100_v23 = vand.u32 127, %v99_v22 }
   0x4   :  { %25 = vperm.xlu0 %125, %v15_v4   ;;  %72 = vperm.xlu1 %126, %v17_v7  }
   0x5   :  { %vm101_vm3 = vcmp.lt.s32.totalorder %v100_v23, 8 }
   0xc   :  { %20 = vperm.xlu0 %125, %v14_v5  }
  0x76   :  { %v26_v6 = vpop.permute.xlu0 %25  ;;  %v73_v24 = vpop.permute.xlu1 %72 }
  0x7e   :  { %v21_v8 = vpop.permute.xlu0 %20 }
  0x80   :  { %v56_v9 = vpop.f32.mrf.mxu0 }
  0x81   :  { %v57_v10 = vadd.f32 %v56_v9, %v21_v8 }
  0x83   :  { %v62_v11 = vmul.f32 0.5, %v57_v10 }
  0x85   :  { %127 = vtanh.f32 %v62_v11 }
  0x86   :  { %v59_v12 = vpop.f32.mrf.mxu2 }
  0x87   :  { %v60_v13 = vadd.f32 %v59_v12, %v26_v6 }
  0x89   :  { %v63_v14 = vmul.f32 0.5, %v60_v13 }
  0x8b   :  { %129 = vtanh.f32 %v63_v14  ;;  %v128_v15 = vpop.eup %127 }
  0x8c   :  { %v66_v18 = vadd.f32 1.0, %v128_v15 }
  0x8e   :  { %v68_v20 = vmul.f32 0.5, %v66_v18 }
  0x91   :  { %v130_v16 = vpop.eup %129 }
  0x92   :  { %v67_v17 = vadd.f32 1.0, %v130_v16 }
  0x94   :  { %v69_v19 = vmul.f32 0.5, %v67_v17 }
  0x96   :  { %93 = vmatpush.msra.mxu1 %v69_v19 }
  0x98   :  { %94 = vmatpush.msra.mxu1 %v68_v20 }
  0x99   :  { %122 = vmatmul.msk.f32.vlgmr.msra.gmra.mxu1 %vm75_vm2, %v16_v21 }
 0x116   :  { %v96_v25 = vpop.f32.mrf.mxu1 }
 0x117   :  { %v97_v26 = vadd.f32 %v96_v25, %v73_v24 }
 0x119   :  { %v102_v27 = vsel %vm101_vm3, %v97_v26, -inf }
 0x11a   :  { %v103_v28 = vsel %vm35_vm0, %v102_v27, -inf }
 0x11b   :  { %104 = vmax.xlane.f32.xlu1 %v103_v28 }
 0x18e   :  { %v105_v29 = vpop.xlane.xlu1 %104 }
 0x18f   :  { %v106_v30 = vsub.f32 %v102_v27, %v105_v29 }
 0x191   :  { %v107_v31 = vmul.f32 1.442695, %v106_v30 }
 0x193   :  { %131 = vpow2.f32 %v107_v31 }
 0x199   :  { %v132_v32 = vpop.eup %131 }
 0x19a   :  { %v109_v33 = vsel %vm35_vm0, %v132_v32, 0.0 }
 0x19b   :  { %110 = vadd.xlane.f32.xlu2 %v109_v33 }
 0x20e   :  { %v111_v34 = vpop.xlane.xlu2 %110 }
 0x20f   :  { %133 = vrcp.f32 %v111_v34 }
 0x215   :  { %v134_v35 = vpop.eup %133 }
 0x216   :  { %v113_v36 = vmul.f32 %v134_v35, %v132_v32 }
 0x218   :  { %114 = vst [vmem:[%s181_s2] sm:$0xf] %v113_v36 }

</bundles_post_ra>
